<compile_context>
chip_gen: v6e
topology: v6e:2x2x1
jax: 0.10.0
libtpu: 0.0.40
codegen_flags: <defaults>
</compile_context>

<pallas_src>
import jax
import jax.numpy as jnp
import numpy as np
from jax.experimental import pallas as pl
from jax.experimental.pallas import tpu as pltpu


def arm_kernel(x_ref, wt_ref, b_ref, out_ref, att_ref):
    """ARM forward for one block of Nb batch elements.

    x_ref   : (Nb, C, HW)  input tile
    wt_ref  : (C, C)       1x1 conv weight, pre-transposed (in_ch, out_ch)
    b_ref   : (1, C)       conv bias
    out_ref : (Nb, C, HW)  x * sigmoid(conv(avgpool(x)))
    att_ref : (Nb, 1, C)   attention, lane-dense (reshaped outside)
    """
    x = x_ref[...]                                   # (Nb, C, HW)
    xf = x.astype(jnp.float32)
    # AdaptiveAvgPool2d((1,1)) == mean over the full spatial extent.
    pooled = jnp.mean(xf, axis=2)                    # (Nb, C)
    # 1x1 conv == dense layer over channels; one (Nb,C)@(C,C) matmul.
    logits = jnp.dot(pooled, wt_ref[...],
                     preferred_element_type=jnp.float32) + b_ref[...]
    att = jax.nn.sigmoid(logits)                     # (Nb, C), f32
    out_ref[...] = (xf * att[:, :, None]).astype(out_ref.dtype)
    att_ref[...] = att[:, None, :].astype(att_ref.dtype)


def _pick_batch_block(n, block_bytes, budget_bytes):
    """Largest divisor of n whose input block stays under the VMEM budget."""
    for cand in range(n, 0, -1):
        if n % cand == 0 and cand * block_bytes <= budget_bytes:
            return cand
    return 1


def arm_forward(x, w, b, attention_single=False,
                *, vmem_budget_bytes=8 * 1024 * 1024):
    """x: (N, C, H, W); w: (C, C, 1, 1) (out_ch, in_ch, 1, 1); b: (C,)."""
    N, C, H, W = x.shape
    HW = H * W
    x_flat = x.reshape(N, C, HW)
    wt = w.reshape(C, C).T.astype(jnp.float32)       # (in_ch, out_ch)
    b2 = b.reshape(1, C).astype(jnp.float32)

    # Batch blocking: 2 double-buffered copies of input + output blocks are
    # resident, so keep one block well under the scoped-VMEM limit (budget
    # sized for v7x's 64 MiB VMEM as well as v5e/v6e).
    block_bytes = C * HW * x.dtype.itemsize
    nb = _pick_batch_block(N, block_bytes, vmem_budget_bytes)
    grid = (N // nb,)
    # TODO(synk): for very large C*HW (block > budget even at nb=1), add an HW
    # tiling axis with a sum accumulator (two-phase pool-then-multiply).

    out_flat, att3 = pl.pallas_call(
        arm_kernel,
        out_shape=(
            jax.ShapeDtypeStruct((N, C, HW), x.dtype),
            jax.ShapeDtypeStruct((N, 1, C), x.dtype),
        ),
        grid=grid,
        in_specs=[
            pl.BlockSpec((nb, C, HW), lambda n: (n, 0, 0)),
            pl.BlockSpec((C, C), lambda n: (0, 0)),
            pl.BlockSpec((1, C), lambda n: (0, 0)),
        ],
        out_specs=(
            pl.BlockSpec((nb, C, HW), lambda n: (n, 0, 0)),
            pl.BlockSpec((nb, 1, C), lambda n: (n, 0, 0)),
        ),
        compiler_params=pltpu.CompilerParams(
            dimension_semantics=("parallel",),
            vmem_limit_bytes=64 * 1024 * 1024,
        ),
    )(x_flat, wt, b2)

    out = out_flat.reshape(N, C, H, W)
    att = att3.reshape(N, C, 1, 1)
    if attention_single:
        return out, att
    return out


def arm_reference(x, w, b):
    # pure-JAX reference of the PyTorch forward
    C = w.shape[0]
    pooled = jnp.mean(x, axis=(2, 3))                          # (N, C)
    logits = jnp.einsum("nc,oc->no", pooled, w.reshape(C, C)) + b
    att = jax.nn.sigmoid(logits)[:, :, None, None]             # (N, C, 1, 1)
    return x * att, att


if __name__ == "__main__":
    key = jax.random.PRNGKey(0)
    kx, kw, kb = jax.random.split(key, 3)

    N, C, H, W = 2, 4, 16, 16
    x = jax.random.normal(kx, (N, C, H, W), dtype=jnp.float32)
    # Conv2d(channel, channel, kernel_size=1): weight (C, C, 1, 1), bias (C,)
    w = jax.random.normal(kw, (C, C, 1, 1), dtype=jnp.float32) * 0.1
    b = jax.random.normal(kb, (C,), dtype=jnp.float32) * 0.1

    out, att = arm_forward(x, w, b, attention_single=True)
    out = jax.block_until_ready(out)
    att = jax.block_until_ready(att)

    out_ref, att_ref = arm_reference(x, w, b)
    np.testing.assert_allclose(np.asarray(out), np.asarray(out_ref),
                               rtol=1e-5, atol=1e-5)
    np.testing.assert_allclose(np.asarray(att), np.asarray(att_ref),
                               rtol=1e-5, atol=1e-5)

    print("KERNEL_OK")
</pallas_src>

<mosaic_0001>
module attributes {stable_mosaic.version = 11 : i64} {
  func.func @arm_kernel(%arg0: i32, %arg1: memref<2x4x256xf32, #tpu.memory_space<vmem>>, %arg2: memref<4x4xf32, #tpu.memory_space<vmem>>, %arg3: memref<1x4xf32, #tpu.memory_space<vmem>>, %arg4: memref<2x4x256xf32, #tpu.memory_space<vmem>>, %arg5: memref<2x1x4xf32, #tpu.memory_space<vmem>>) attributes {dimension_semantics = [#tpu.dimension_semantics<parallel>], iteration_bounds = array<i64: 1>, scalar_prefetch = 0 : i64, scratch_operands = 0 : i64, tpu.core_type = #tpu.core_type<tc>, window_params = [{transform_indices = @transform_0, window_bounds = array<i64: 2, 4, 256>}, {pipeline_mode = #tpu.pipeline_mode<synchronous>, transform_indices = @transform_1, window_bounds = array<i64: 4, 4>}, {pipeline_mode = #tpu.pipeline_mode<synchronous>, transform_indices = @transform_2, window_bounds = array<i64: 1, 4>}, {transform_indices = @transform_3, window_bounds = array<i64: 2, 4, 256>}, {transform_indices = @transform_4, window_bounds = array<i64: 2, 1, 4>}]} {
    %c0 = arith.constant 0 : index
    %c0_0 = arith.constant 0 : index
    %c0_1 = arith.constant 0 : index
    %0 = vector.load %arg1[%c0, %c0_0, %c0_1] : memref<2x4x256xf32, #tpu.memory_space<vmem>>, vector<2x4x256xf32>
    %cst = arith.constant dense<0.000000e+00> : vector<2x4xf32>
    %1 = vector.multi_reduction <add>, %0, %cst [2] : vector<2x4x256xf32> to vector<2x4xf32>
    %cst_2 = arith.constant 2.560000e+02 : f32
    %2 = vector.broadcast %cst_2 : f32 to vector<2x4xf32>
    %3 = arith.divf %1, %2 : vector<2x4xf32>
    %c0_3 = arith.constant 0 : index
    %c0_4 = arith.constant 0 : index
    %4 = vector.load %arg2[%c0_3, %c0_4] : memref<4x4xf32, #tpu.memory_space<vmem>>, vector<4x4xf32>
    %cst_5 = arith.constant dense<0.000000e+00> : vector<2x4xf32>
    %5 = tpu.matmul %3, %4, %cst_5 {dimension_numbers = #tpu.dot_dimension_numbers<[1], [0], [0], [1], [0, 0, 1, 1], [], []>} : vector<2x4xf32>, vector<4x4xf32>, vector<2x4xf32> -> vector<2x4xf32>
    %c0_6 = arith.constant 0 : index
    %c0_7 = arith.constant 0 : index
    %6 = vector.load %arg3[%c0_6, %c0_7] : memref<1x4xf32, #tpu.memory_space<vmem>>, vector<1x4xf32>
    %7 = vector.broadcast %6 : vector<1x4xf32> to vector<2x4xf32>
    %8 = arith.addf %5, %7 : vector<2x4xf32>
    %9 = arith.negf %8 : vector<2x4xf32>
    %10 = math.exp %9 : vector<2x4xf32>
    %cst_8 = arith.constant 1.000000e+00 : f32
    %11 = vector.broadcast %cst_8 : f32 to vector<2x4xf32>
    %12 = arith.addf %11, %10 : vector<2x4xf32>
    %13 = arith.divf %11, %12 : vector<2x4xf32>
    %14 = vector.shape_cast %13 : vector<2x4xf32> to vector<2x4x1xf32>
    %15 = vector.broadcast %14 : vector<2x4x1xf32> to vector<2x4x256xf32>
    %16 = arith.mulf %0, %15 : vector<2x4x256xf32>
    %c0_9 = arith.constant 0 : index
    %c0_10 = arith.constant 0 : index
    %c0_11 = arith.constant 0 : index
    %17 = vector.load %arg4[%c0_9, %c0_10, %c0_11] : memref<2x4x256xf32, #tpu.memory_space<vmem>>, vector<2x4x256xf32>
    tpu.vector_store %arg4[%c0_9, %c0_10, %c0_11], %16 {strides = array<i32>} : memref<2x4x256xf32, #tpu.memory_space<vmem>>, vector<2x4x256xf32>,
    %18 = vector.shape_cast %13 : vector<2x4xf32> to vector<2x1x4xf32>
    %c0_12 = arith.constant 0 : index
    %c0_13 = arith.constant 0 : index
    %c0_14 = arith.constant 0 : index
    %19 = vector.load %arg5[%c0_12, %c0_13, %c0_14] : memref<2x1x4xf32, #tpu.memory_space<vmem>>, vector<2x1x4xf32>
    tpu.vector_store %arg5[%c0_12, %c0_13, %c0_14], %18 {strides = array<i32>} : memref<2x1x4xf32, #tpu.memory_space<vmem>>, vector<2x1x4xf32>,
    return
  }
  func.func @transform_0(%arg0: i32) -> (i32, i32, i32) {
    %c0_i32 = arith.constant 0 : i32
    %c0_i32_0 = arith.constant 0 : i32
    %c0_i32_1 = arith.constant 0 : i32
    return %arg0, %c0_i32, %c0_i32_0 : i32, i32, i32
  }
  func.func @transform_1(%arg0: i32) -> (i32, i32) {
    %c0_i32 = arith.constant 0 : i32
    %c0_i32_0 = arith.constant 0 : i32
    %c0_i32_1 = arith.constant 0 : i32
    return %c0_i32, %c0_i32_0 : i32, i32
  }
  func.func @transform_2(%arg0: i32) -> (i32, i32) {
    %c0_i32 = arith.constant 0 : i32
    %c0_i32_0 = arith.constant 0 : i32
    %c0_i32_1 = arith.constant 0 : i32
    return %c0_i32, %c0_i32_0 : i32, i32
  }
  func.func @transform_3(%arg0: i32) -> (i32, i32, i32) {
    %c0_i32 = arith.constant 0 : i32
    %c0_i32_0 = arith.constant 0 : i32
    %c0_i32_1 = arith.constant 0 : i32
    return %arg0, %c0_i32, %c0_i32_0 : i32, i32, i32
  }
  func.func @transform_4(%arg0: i32) -> (i32, i32, i32) {
    %c0_i32 = arith.constant 0 : i32
    %c0_i32_0 = arith.constant 0 : i32
    %c0_i32_1 = arith.constant 0 : i32
    return %arg0, %c0_i32, %c0_i32_0 : i32, i32, i32
  }
}

</mosaic_0001>

<bundles_post_ra>
// kernel: tpu_custom_call.1
= control target key start
LH: loop header
LB: loop body
LE: loop exit
PB: predicated region body
PF: predicated region fallthrough
CT: control target
= control target key end

     0   :  { %10 = vsyncpa [#allocation3], 0  ;;  %s460_s0 = inlined_call_operand.hbm [shape: f32[2,4,256], index: 0, kind: input, shape index: {}]   ;;  %s461_s1 = inlined_call_operand.hbm [shape: f32[4,4], index: 1, kind: input, shape index: {}]   ;;  %s462_s2 = inlined_call_operand.vmem [shape: f32[1,4], index: 2, kind: input, shape index: {}]   ;;  %s463_s3 = inlined_call_operand.hbm [shape: f32[2,4,256], index: 3, kind: output, shape index: {0}]   ;;  %s464_s4 = inlined_call_operand.hbm [shape: f32[2,1,4], index: 4, kind: output, shape index: {1}]  }
   0x1   :  { %11 = vsyncpa [#allocation6], 0 }
   0x2   :  { %12 = vsyncpa [#allocation4], 0 }
   0x3   :  { %13 = vsyncpa [#allocation9], 0  ;;  %s385_s15 = smov [#allocation2]  }
   0x4   :  { %s19_s16 = sshll.u32 %s385_s15, 4  ;;  %s20_s16 = int_to_ptr.vmem [resolvable:$true] %s19_s16 }
   0x5   :  { %s305_s17 = scalar_lea.vmem %s20_s16, 256  ;;  %p310_p1 = scmp.lt.s32.totalorder %s20_s16, %s20_s16 }
   0x6   :  { %p306_p0 = scmp.ne.s32.totalorder %s20_s16, %s305_s17  ;;  %p311_p2 = scmp.lt.s32.totalorder %s305_s17, %s305_s17 }
   0x8   :  { %p312_p3 = por %p311_p2, %p310_p1 }
   0xa   :  { %p313_p4 = pnand %p312_p3, %p306_p0 }
   0xc   :  { %316 = shalt.err (!%p313_p4)
}
   0xd   :  { %s386_s18 = smov 128   ;;  %s387_s19 = smov 8  }
   0xe   :  { %25 = dma.hbm_to_vmem [thread:$0]  %s460_s0, 256, %s20_s16, [#allocation3], %s386_s18, %s386_s18, %s387_s19  }
   0xf   :  { %s388_s22 = smov [#allocation5]  }
  0x10   :  { %s32_s23 = sshll.u32 %s388_s22, 4  ;;  %s33_s23 = int_to_ptr.vmem [resolvable:$true] %s32_s23 }
  0x11   :  { %s325_s24 = scalar_lea.vmem %s33_s23, 64  ;;  %p330_p6 = scmp.lt.s32.totalorder %s33_s23, %s33_s23 }
  0x12   :  { %p326_p5 = scmp.ne.s32.totalorder %s33_s23, %s325_s24  ;;  %p331_p7 = scmp.lt.s32.totalorder %s325_s24, %s325_s24 }
  0x14   :  { %p332_p8 = por %p331_p7, %p330_p6 }
  0x16   :  { %p333_p9 = pnand %p332_p8, %p326_p5 }
  0x18   :  { %336 = shalt.err (!%p333_p9)
}
  0x19   :  { %35 = dma.hbm_to_vmem [thread:$0]  %s461_s1, 64, %s33_s23, [#allocation6]  }
  0x1a   :  { %377 = dma.done.wait [#allocation3], 256  }
  0x1b   :  { %378 = vsyncadd [#allocation3], 4294967040 }
  0x1c   :  { %379 = dma.done.wait [#allocation6], 64  }
  0x1d   :  { %380 = vsyncadd [#allocation6], 4294967232  ;;  %vm52_vm0 = vcmask 1043456   ;;  %v431_v0 = vld [vmem:[#allocation2] sm:$0xff]  ;;  %v433_v1 = vld [vmem:[#allocation2 + $0x8] sm:$0xff]  ;;  %v389_v11 = vmov 0.0   ;;  %v76_v12 = vlaneseq }
  0x1e   :  { %v48_v2 = vcombine.high %v431_v0, %v431_v0  ;;  %v53_v3 = vsel %vm52_vm0, %v431_v0, 0.0  ;;  %v49_v4 = vcombine.high %v433_v1, %v433_v1  ;;  %v58_v6 = vsel %vm52_vm0, %v433_v1, 0.0  ;;  %v66_v10 = vld [vmem:[#allocation5] sm:$0xf]  ;;  %274 = vmatprep.subr.mxu0 %v389_v11  ;;  %v268_v23 = vld [vmem:[%s462_s2] ss:$0 sm:$0xff] }
  0x1f   :  { %vm390_vm1 = vmmov 0   ;;  %275 = vmatpush3.msk.msra.mxu0 %vm52_vm0, %v66_v10  ;;  %v77_v13 = vand.u32 127, %v76_v12  ;;  %v79_v14 = vshrl.u32 %v76_v12, 7  ;;  %vm86_vm2 = vcmask 1041409   ;;  %s392_s27 = smov [#allocation8]  }
  0x20   :  { %v54_v5 = vsel %vm52_vm0, %v48_v2, 0.0  ;;  %v59_v7 = vsel %vm52_vm0, %v49_v4, 0.0  ;;  %276 = vmatprep.mubr.msk.f32.mxu0 %vm390_vm1, %v389_v11  ;;  %vm88_vm3 = vcmask 31744   ;;  %v391_v30 = vmov 1966171168   ;;  %s251_s28 = sshll.u32 %s392_s27, 4  ;;  %s252_s28 = int_to_ptr.vmem [resolvable:$true] %s251_s28 }
  0x21   :  { %v55_v8 = vadd.f32 %v54_v5, %v53_v3  ;;  %v60_v9 = vadd.f32 %v59_v7, %v58_v6  ;;  %v80_v16 = vsub.s32 %v77_v13, %v79_v14  ;;  %v208_v31 = vunpack.c.l.s4 %v391_v30  ;;  %s337_s2 = scalar_lea.vmem %s252_s28, 32  ;;  %p342_p11 = scmp.lt.s32.totalorder %s252_s28, %s252_s28 }
  0x22   :  { %v172_v33 = vsub.s32 0, %v79_v14  ;;  %v179_v37 = vsub.s32 1, %v79_v14  ;;  %vm231_vm4 = vcmask 24576   ;;  %p338_p10 = scmp.ne.s32.totalorder %s252_s28, %s337_s2  ;;  %p343_p12 = scmp.lt.s32.totalorder %s337_s2, %s337_s2 }
  0x23   :  { %56 = vadd.xlane.f32.xlu0 %v55_v8  ;;  %v209_v32 = vunpack.c.0.s8 %v208_v31 }
  0x24   :  { %p344_p13 = por %p343_p12, %p342_p11 }
  0x25   :  { %v212_v34 = vsub.s32 %v209_v32, %v79_v14 }
  0x26   :  { %p345_p0 = pnand %p344_p13, %p338_p10 }
  0x27   :  { %61 = vadd.xlane.f32.xlu0 %v60_v9 }
  0xac   :  { %v57_v15 = vpop.xlane.xlu0 %56 }
  0xad   :  { %v64_v17 = vmul.f32 0.00390625, %v57_v15 }
  0xaf   :  { %v81_v20 = vrot.slane %v64_v17, %v80_v16 }
  0xb0   :  { %v62_v18 = vpop.xlane.xlu0 %61 }
  0xb1   :  { %v65_v19 = vmul.f32 0.00390625, %v62_v18 }
  0xb3   :  { %v85_v21 = vrot.slane %v65_v19, %v80_v16 }
  0xb5   :  { %v87_v22 = vsel %vm86_vm2, %v85_v21, %v81_v20 }
  0xb6   :  { %277 = vmatmul.mubr.msk.f32.vlgmr.msra.gmra.mxu0 %vm88_vm3, %v87_v22 }
 0x176   :  { %v160_v24 = vpop.f32.mrf.mxu0 }
 0x177   :  { %v161_v25 = vadd.f32 %v268_v23, %v160_v24 }
 0x178   :  { %v278_v26 = vpop.f32.mrf.mxu0 }
 0x179   :  { %v271_v27 = vmul.f32 -1.442695, %v161_v25 }
 0x17b   :  { %293 = vpow2.f32 %v271_v27 }
 0x188   :  { %v294_v28 = vpop.eup %293 }
 0x189   :  { %v167_v29 = vadd.f32 1.0, %v294_v28 }
 0x18b   :  { %295 = vrcp.f32 %v167_v29 }
 0x198   :  { %v296_v35 = vpop.eup %295 }
 0x199   :  { %v173_v36 = vrot.slane %v296_v35, %v172_v33  ;;  %v213_v38 = vrot.slane %v296_v35, %v212_v34  ;;  %v180_v41 = vrot.slane %v296_v35, %v179_v37 }
 0x19b   :  { %175 = vbcast.lane.b32.xlu1 %v173_v36, 256  ;;  %v214_v39 = vcombine.high %v213_v38, %v213_v38  ;;  %v221_v40 = vrot.slane %v213_v38, %v212_v34 }
 0x19d   :  { %v228_v42 = vrot.slane %v214_v39, %v212_v34  ;;  %232 = vst.msk [vmem:[#allocation8] sm:$0x1] %vm231_vm4, %v221_v40 }
 0x19f   :  { %182 = vbcast.lane.b32.xlu1 %v180_v41, 256  ;;  %233 = vst.msk [vmem:[#allocation8 + $0x1] sm:$0x1] %vm231_vm4, %v228_v42 }
 0x1a0   :  { %348 = shalt.err (!%p345_p0)
}
 0x1a1   :  { %s393_s29 = smov 16   ;;  %s394_s30 = smov 1   ;;  %v395_v43 = vmov 839922192  }
 0x1a2   :  { %257 = dma.vmem_to_hbm [thread:$0]  %s252_s28, 32, %s464_s4, [#allocation9], %s393_s29, %s393_s29, %s394_s30   ;;  %v187_v44 = vunpack.c.l.s4 %v395_v43 }
 0x1a3   :  { %s396_s7 = smov [#allocation7]  }
 0x1a4   :  { %v188_v45 = vunpack.c.0.s8 %v187_v44  ;;  %s239_s8 = sshll.u32 %s396_s7, 4  ;;  %s240_s8 = int_to_ptr.vmem [resolvable:$true] %s239_s8 }
 0x1a5   :  { %s357_s9 = scalar_lea.vmem %s240_s8, 256  ;;  %p362_p2 = scmp.lt.s32.totalorder %s240_s8, %s240_s8 }
 0x1a6   :  { %v191_v46 = vsub.s32 %v188_v45, %v79_v14  ;;  %p358_p1 = scmp.ne.s32.totalorder %s240_s8, %s357_s9  ;;  %p363_p3 = scmp.lt.s32.totalorder %s357_s9, %s357_s9 }
 0x1a8   :  { %p364_p4 = por %p363_p3, %p362_p2 }
 0x1aa   :  { %p365_p5 = pnand %p364_p4, %p358_p1 }
 0x20d   :  { %v176_v47 = vpop.permute.xlu1 %175 }
 0x20e   :  { %v192_v48 = vrot.slane %v176_v47, %v191_v46 }
 0x210   :  { %v202_v49 = vmul.f32 %v192_v48, %v431_v0 }
 0x211   :  { %v183_v50 = vpop.permute.xlu1 %182 }
 0x212   :  { %204 = vst [vmem:[#allocation7] sm:$0xff] %v202_v49  ;;  %v199_v51 = vrot.slane %v183_v50, %v191_v46 }
 0x214   :  { %v203_v52 = vmul.f32 %v199_v51, %v433_v1 }
 0x216   :  { %205 = vst [vmem:[#allocation7 + $0x8] sm:$0xff] %v203_v52 }
 0x217   :  { %368 = shalt.err (!%p365_p5)
}
 0x218   :  { %245 = dma.vmem_to_hbm [thread:$0]  %s240_s8, 256, %s463_s3, [#allocation4], %s386_s18, %s386_s18, %s387_s19  }
 0x219   :  { %381 = dma.done.wait [#allocation4], 256  }
 0x21a   :  { %382 = vsyncadd [#allocation4], 4294967040 }
 0x21b   :  { %383 = dma.done.wait [#allocation9], 32  }
 0x21c   :  { %384 = vsyncadd [#allocation9], 4294967264 }
 0x21d   :  { %264 = vsyncpa [#allocation3], 1 }
 0x21e   :  { %265 = vsyncpa [#allocation6], 1 }
 0x21f   :  { %266 = vsyncpa [#allocation4], 1 }
 0x220   :  { %267 = vsyncpa [#allocation9], 1 }

</bundles_post_ra>
